<compile_context>
chip_gen: v5e
topology: v5e:2x2
jax: 0.10.0
libtpu: 0.0.40
codegen_flags: <defaults>
</compile_context>

<pallas_src>
import functools

import jax
import jax.numpy as jnp
from jax import lax
from jax.experimental import pallas as pl
from jax.experimental.pallas import tpu as pltpu


def _round_up(v, m):
    return ((v + m - 1) // m) * m


def _default_acts_dtype():
    """bf16 activations/tanh only where the VPU/EUP are bf16-capable (v6e/v7x).

    v5e and older have no bf16 VPU/EUP, so casting would only add convert ops;
    keep the f32 path there.
    """
    try:
        kind = jax.devices()[0].device_kind.lower()
    except Exception:
        return jnp.float32
    if "v6" in kind or "v7" in kind:
        return jnp.bfloat16
    return jnp.float32


def mlp_kernel(x_ref, w_in_ref, b_in_ref, w_h_ref, b_h_ref, w_out_ref, b_out_ref,
               o_ref, *, n_hidden_layers, acts_dtype):
    """One batch tile of the MLP, entirely in VMEM.

    x_ref:     (TB, D_in)  native batch-major tile (only D_in lanes used per row,
                            but D_in is tiny, so the DMA cost is negligible).
    w_in_ref:  (N, D_in)       b_in_ref:  (N, 1)
    w_h_ref:   (H-1, N, N)     b_h_ref:   (H-1, N, 1)   (dummy (1,N,N)/(1,N,1) if H == 1)
    w_out_ref: (D_out, N)      b_out_ref: (D_out, 1)
    o_ref:     (D_out, TB)     lane-dense output tile (unmasked vst).

    Activations stay lane-dense (N, TB): batch on the 128-lane axis, so the
    EUP tanh and VPU bias adds run on fully packed vregs.  Matmul accumulation
    is always f32; `acts_dtype` (bf16 on v6e/v7x) only affects the tanh/matmul
    operand dtype.
    """
    x = x_ref[...].astype(acts_dtype)
    w_in = w_in_ref[...].astype(acts_dtype)
    # (N, D_in) contracted with (TB, D_in) over D_in -> (N, TB) (rhs-transposed dot),
    # avoiding any wrapper-side transpose of x.
    pre = lax.dot_general(
        w_in, x, (((1,), (1,)), ((), ())),
        preferred_element_type=jnp.float32) + b_in_ref[...]
    h = jnp.tanh(pre.astype(acts_dtype))

    # Static Python loop over hidden layers (traced once; small fixed depth).
    for k in range(n_hidden_layers - 1):
        pre = jnp.dot(w_h_ref[k].astype(acts_dtype), h,
                      preferred_element_type=jnp.float32) + b_h_ref[k]
        h = jnp.tanh(pre.astype(acts_dtype))

    out = jnp.dot(w_out_ref[...].astype(acts_dtype), h,
                  preferred_element_type=jnp.float32) + b_out_ref[...]
    o_ref[...] = out.astype(o_ref.dtype)


def neural_net_forward(x, w_in, b_in, w_h, b_h, w_out, b_out, *,
                       n_hidden_layers, batch_tile=None, acts_dtype=None,
                       max_batch_tile=8192):
    """x: (batch, D_in) as in PyTorch; returns (batch, D_out) in float32."""
    batch, d_in = x.shape
    n = w_in.shape[0]
    d_out = w_out.shape[0]
    h_stack = w_h.shape[0]          # max(n_hidden_layers - 1, 1) (dummy when H == 1)

    if acts_dtype is None:
        acts_dtype = _default_acts_dtype()

    # Batch tile: as large as possible (per-grid-step overhead ~0.35 us dominates a
    # 32-neuron MLP at small tiles), multiple of 256 (full MXU lane pass on v6e/v7x;
    # also satisfies v5e's 128), capped at 8192 (VMEM use ~ a couple of MiB).
    align = 256
    if batch_tile is None:
        tb = min(_round_up(batch, align), max_batch_tile)
    else:
        tb = _round_up(int(batch_tile), align)
    num_tiles = pl.cdiv(batch, tb)
    padded = num_tiles * tb

    x = x.astype(jnp.float32)
    if padded != batch:
        # Row-only zero pad (no transpose); a few KiB for typical PINN inputs.
        x = jnp.pad(x, ((0, padded - batch), (0, 0)))

    flops = 2 * padded * (d_in * n + (n_hidden_layers - 1) * n * n + n * d_out)
    transcendentals = padded * n * n_hidden_layers
    bytes_accessed = 4 * (padded * (d_in + d_out) + w_in.size + b_in.size
                          + w_h.size + b_h.size + w_out.size + b_out.size)

    out_t = pl.pallas_call(
        functools.partial(mlp_kernel, n_hidden_layers=n_hidden_layers,
                          acts_dtype=acts_dtype),
        out_shape=jax.ShapeDtypeStruct((d_out, padded), jnp.float32),
        grid_spec=pltpu.PrefetchScalarGridSpec(
            num_scalar_prefetch=0,
            grid=(num_tiles,),
            in_specs=[
                pl.BlockSpec((tb, d_in), lambda i: (i, 0)),        # x tile (pipelined)
                pl.BlockSpec((n, d_in), lambda i: (0, 0)),         # weights: resident
                pl.BlockSpec((n, 1), lambda i: (0, 0)),
                pl.BlockSpec((h_stack, n, n), lambda i: (0, 0, 0)),
                pl.BlockSpec((h_stack, n, 1), lambda i: (0, 0, 0)),
                pl.BlockSpec((d_out, n), lambda i: (0, 0)),
                pl.BlockSpec((d_out, 1), lambda i: (0, 0)),
            ],
            out_specs=pl.BlockSpec((d_out, tb), lambda i: (0, i)),  # lane-dense store
        ),
        compiler_params=pltpu.CompilerParams(
            # Megacore sharding of the batch axis on v7x; on v5e/v6e (1 TC) this is
            # a no-op.  If a v7x trace shows an idle TC, use pltpu.CORE_PARALLEL.
            dimension_semantics=("parallel",),
            vmem_limit_bytes=32 * 1024 * 1024,
        ),
        cost_estimate=pl.CostEstimate(
            flops=flops,
            transcendentals=transcendentals,
            bytes_accessed=bytes_accessed,
        ),
    )(x, w_in, b_in, w_h, b_h, w_out, b_out)

    # Drop padding and return PyTorch-convention (batch, D_out).  D_out is tiny
    # (typically 1), so this transpose touches only batch*D_out floats and is
    # negligible next to the kernel; the in-kernel store stays lane-dense.
    return out_t[:, :batch].T


def xavier_uniform(key, fan_out, fan_in, gain):
    """PyTorch xavier_uniform_ on a (out_features, in_features) weight."""
    bound = gain * jnp.sqrt(6.0 / (fan_in + fan_out))
    return jax.random.uniform(key, (fan_out, fan_in), jnp.float32, -bound, bound)


def init_params(key, input_dimension, output_dimension, n_hidden_layers, neurons):
    gain = 5.0 / 3.0  # nn.init.calculate_gain('tanh')
    keys = jax.random.split(key, n_hidden_layers + 1)
    w_in = xavier_uniform(keys[0], neurons, input_dimension, gain)
    b_in = jnp.zeros((neurons, 1), jnp.float32)
    if n_hidden_layers > 1:
        w_h = jnp.stack(
            [xavier_uniform(keys[1 + k], neurons, neurons, gain)
             for k in range(n_hidden_layers - 1)], axis=0)          # (H-1, N, N)
        b_h = jnp.zeros((n_hidden_layers - 1, neurons, 1), jnp.float32)
    else:
        # Dummy (never read by the kernel): avoids zero-sized operands.
        w_h = jnp.zeros((1, neurons, neurons), jnp.float32)
        b_h = jnp.zeros((1, neurons, 1), jnp.float32)
    w_out = xavier_uniform(keys[-1], output_dimension, neurons, gain)
    b_out = jnp.zeros((output_dimension, 1), jnp.float32)
    return w_in, b_in, w_h, b_h, w_out, b_out


def reference_forward(x, w_in, b_in, w_h, b_h, w_out, b_out, *, n_hidden_layers):
    h = jnp.tanh(x @ w_in.T + b_in[:, 0])
    for k in range(n_hidden_layers - 1):
        h = jnp.tanh(h @ w_h[k].T + b_h[k, :, 0])
    return h @ w_out.T + b_out[:, 0]


if __name__ == "__main__":
    # Small shapes consistent with the PINN-style MLP module.
    input_dimension = 2
    output_dimension = 1
    n_hidden_layers = 3
    neurons = 32

    key = jax.random.PRNGKey(0)
    k_x1, k_x2, k_x3, k_p = jax.random.split(key, 4)
    params = init_params(k_p, input_dimension, output_dimension,
                         n_hidden_layers, neurons)

    # Case 1: tiny batch, f32 path (single grid step after 256-alignment).
    x_small = jax.random.normal(k_x1, (8, input_dimension), jnp.float32)
    out_small = jax.block_until_ready(
        neural_net_forward(x_small, *params, n_hidden_layers=n_hidden_layers,
                           acts_dtype=jnp.float32))
    ref_small = reference_forward(x_small, *params, n_hidden_layers=n_hidden_layers)
    assert out_small.shape == (8, output_dimension)
    assert jnp.allclose(out_small, ref_small, atol=1e-5, rtol=1e-5)

    # Case 2: non-multiple batch with a small explicit tile -> multi-step grid
    # plus row padding, f32 path.
    x_big = jax.random.normal(k_x2, (1037, input_dimension), jnp.float32)
    out_big = jax.block_until_ready(
        neural_net_forward(x_big, *params, n_hidden_layers=n_hidden_layers,
                           batch_tile=512, acts_dtype=jnp.float32))
    ref_big = reference_forward(x_big, *params, n_hidden_layers=n_hidden_layers)
    assert out_big.shape == (1037, output_dimension)
    assert jnp.allclose(out_big, ref_big, atol=1e-5, rtol=1e-5)

    # Case 3: 256-aligned batch -> no padding, adaptive large tile, default
    # device-dependent activation dtype (bf16 on v6e/v7x, f32 on v5e and older).
    x_al = jax.random.normal(k_x3, (2048, input_dimension), jnp.float32)
    out_al = jax.block_until_ready(
        neural_net_forward(x_al, *params, n_hidden_layers=n_hidden_layers))
    ref_al = reference_forward(x_al, *params, n_hidden_layers=n_hidden_layers)
    assert out_al.shape == (2048, output_dimension)
    if _default_acts_dtype() == jnp.bfloat16:
        # bf16 tanh chain with f32 accumulation: loose tolerance.
        assert float(jnp.max(jnp.abs(out_al - ref_al))) < 0.15
    else:
        assert jnp.allclose(out_al, ref_al, atol=1e-5, rtol=1e-5)

    # TODO(synk): `regularization()` (L-p weight-norm penalty) is a training-time
    # scalar, not part of forward(), so it is not implemented as a kernel.
    print("KERNEL_OK")
</pallas_src>

<mosaic_0001>
module attributes {stable_mosaic.version = 11 : i64} {
  func.func @mlp_kernel(%arg0: i32, %arg1: memref<256x2xf32, #tpu.memory_space<vmem>>, %arg2: memref<32x2xf32, #tpu.memory_space<vmem>>, %arg3: memref<32x1xf32, #tpu.memory_space<vmem>>, %arg4: memref<2x32x32xf32, #tpu.memory_space<vmem>>, %arg5: memref<2x32x1xf32, #tpu.memory_space<vmem>>, %arg6: memref<1x32xf32, #tpu.memory_space<vmem>>, %arg7: memref<1x1xf32, #tpu.memory_space<vmem>>, %arg8: memref<1x256xf32, #tpu.memory_space<vmem>>) attributes {dimension_semantics = [#tpu.dimension_semantics<parallel>], iteration_bounds = array<i64: 1>, scalar_prefetch = 0 : i64, scratch_operands = 0 : i64, tpu.core_type = #tpu.core_type<tc>, window_params = [{transform_indices = @transform_0, window_bounds = array<i64: 256, 2>}, {pipeline_mode = #tpu.pipeline_mode<synchronous>, transform_indices = @transform_1, window_bounds = array<i64: 32, 2>}, {pipeline_mode = #tpu.pipeline_mode<synchronous>, transform_indices = @transform_2, window_bounds = array<i64: 32, 1>}, {pipeline_mode = #tpu.pipeline_mode<synchronous>, transform_indices = @transform_3, window_bounds = array<i64: 2, 32, 32>}, {pipeline_mode = #tpu.pipeline_mode<synchronous>, transform_indices = @transform_4, window_bounds = array<i64: 2, 32, 1>}, {pipeline_mode = #tpu.pipeline_mode<synchronous>, transform_indices = @transform_5, window_bounds = array<i64: 1, 32>}, {pipeline_mode = #tpu.pipeline_mode<synchronous>, transform_indices = @transform_6, window_bounds = array<i64: 1, 1>}, {transform_indices = @transform_7, window_bounds = array<i64: 1, 256>}]} {
    %c0 = arith.constant 0 : index
    %c0_0 = arith.constant 0 : index
    %0 = vector.load %arg1[%c0, %c0_0] : memref<256x2xf32, #tpu.memory_space<vmem>>, vector<256x2xf32>
    %c0_1 = arith.constant 0 : index
    %c0_2 = arith.constant 0 : index
    %1 = vector.load %arg2[%c0_1, %c0_2] : memref<32x2xf32, #tpu.memory_space<vmem>>, vector<32x2xf32>
    %cst = arith.constant dense<0.000000e+00> : vector<32x256xf32>
    %2 = tpu.matmul %1, %0, %cst {dimension_numbers = #tpu.dot_dimension_numbers<[1], [1], [0], [0], [0, 0, 1, 0], [], []>} : vector<32x2xf32>, vector<256x2xf32>, vector<32x256xf32> -> vector<32x256xf32>
    %c0_3 = arith.constant 0 : index
    %c0_4 = arith.constant 0 : index
    %3 = vector.load %arg3[%c0_3, %c0_4] : memref<32x1xf32, #tpu.memory_space<vmem>>, vector<32x1xf32>
    %4 = vector.broadcast %3 : vector<32x1xf32> to vector<32x256xf32>
    %5 = arith.addf %2, %4 : vector<32x256xf32>
    %6 = math.tanh %5 : vector<32x256xf32>
    %c0_5 = arith.constant 0 : index
    %c0_6 = arith.constant 0 : index
    %c0_7 = arith.constant 0 : index
    %7 = vector.load %arg4[%c0_5, %c0_6, %c0_7] : memref<2x32x32xf32, #tpu.memory_space<vmem>>, vector<1x32x32xf32>
    %8 = vector.shape_cast %7 : vector<1x32x32xf32> to vector<32x32xf32>
    %cst_8 = arith.constant dense<0.000000e+00> : vector<32x256xf32>
    %9 = tpu.matmul %8, %6, %cst_8 {dimension_numbers = #tpu.dot_dimension_numbers<[1], [0], [0], [1], [0, 0, 1, 1], [], []>} : vector<32x32xf32>, vector<32x256xf32>, vector<32x256xf32> -> vector<32x256xf32>
    %c0_9 = arith.constant 0 : index
    %c0_10 = arith.constant 0 : index
    %c0_11 = arith.constant 0 : index
    %10 = vector.load %arg5[%c0_9, %c0_10, %c0_11] : memref<2x32x1xf32, #tpu.memory_space<vmem>>, vector<1x32x1xf32>
    %11 = vector.shape_cast %10 : vector<1x32x1xf32> to vector<32x1xf32>
    %12 = vector.broadcast %11 : vector<32x1xf32> to vector<32x256xf32>
    %13 = arith.addf %9, %12 : vector<32x256xf32>
    %14 = math.tanh %13 : vector<32x256xf32>
    %c1 = arith.constant 1 : index
    %c0_12 = arith.constant 0 : index
    %c0_13 = arith.constant 0 : index
    %15 = vector.load %arg4[%c1, %c0_12, %c0_13] : memref<2x32x32xf32, #tpu.memory_space<vmem>>, vector<1x32x32xf32>
    %16 = vector.shape_cast %15 : vector<1x32x32xf32> to vector<32x32xf32>
    %cst_14 = arith.constant dense<0.000000e+00> : vector<32x256xf32>
    %17 = tpu.matmul %16, %14, %cst_14 {dimension_numbers = #tpu.dot_dimension_numbers<[1], [0], [0], [1], [0, 0, 1, 1], [], []>} : vector<32x32xf32>, vector<32x256xf32>, vector<32x256xf32> -> vector<32x256xf32>
    %c1_15 = arith.constant 1 : index
    %c0_16 = arith.constant 0 : index
    %c0_17 = arith.constant 0 : index
    %18 = vector.load %arg5[%c1_15, %c0_16, %c0_17] : memref<2x32x1xf32, #tpu.memory_space<vmem>>, vector<1x32x1xf32>
    %19 = vector.shape_cast %18 : vector<1x32x1xf32> to vector<32x1xf32>
    %20 = vector.broadcast %19 : vector<32x1xf32> to vector<32x256xf32>
    %21 = arith.addf %17, %20 : vector<32x256xf32>
    %22 = math.tanh %21 : vector<32x256xf32>
    %c0_18 = arith.constant 0 : index
    %c0_19 = arith.constant 0 : index
    %23 = vector.load %arg6[%c0_18, %c0_19] : memref<1x32xf32, #tpu.memory_space<vmem>>, vector<1x32xf32>
    %cst_20 = arith.constant dense<0.000000e+00> : vector<1x256xf32>
    %24 = tpu.matmul %23, %22, %cst_20 {dimension_numbers = #tpu.dot_dimension_numbers<[1], [0], [0], [1], [0, 0, 1, 1], [], []>} : vector<1x32xf32>, vector<32x256xf32>, vector<1x256xf32> -> vector<1x256xf32>
    %c0_21 = arith.constant 0 : index
    %c0_22 = arith.constant 0 : index
    %25 = vector.load %arg7[%c0_21, %c0_22] : memref<1x1xf32, #tpu.memory_space<vmem>>, vector<1x1xf32>
    %26 = vector.broadcast %25 : vector<1x1xf32> to vector<1x256xf32>
    %27 = arith.addf %24, %26 : vector<1x256xf32>
    %c0_23 = arith.constant 0 : index
    %c0_24 = arith.constant 0 : index
    %28 = vector.load %arg8[%c0_23, %c0_24] : memref<1x256xf32, #tpu.memory_space<vmem>>, vector<1x256xf32>
    tpu.vector_store %arg8[%c0_23, %c0_24], %27 {strides = array<i32>} : memref<1x256xf32, #tpu.memory_space<vmem>>, vector<1x256xf32>,
    return
  }
  func.func @transform_0(%arg0: i32) -> (i32, i32) {
    %c0_i32 = arith.constant 0 : i32
    %c0_i32_0 = arith.constant 0 : i32
    return %arg0, %c0_i32 : i32, i32
  }
  func.func @transform_1(%arg0: i32) -> (i32, i32) {
    %c0_i32 = arith.constant 0 : i32
    %c0_i32_0 = arith.constant 0 : i32
    %c0_i32_1 = arith.constant 0 : i32
    return %c0_i32, %c0_i32_0 : i32, i32
  }
  func.func @transform_2(%arg0: i32) -> (i32, i32) {
    %c0_i32 = arith.constant 0 : i32
    %c0_i32_0 = arith.constant 0 : i32
    %c0_i32_1 = arith.constant 0 : i32
    return %c0_i32, %c0_i32_0 : i32, i32
  }
  func.func @transform_3(%arg0: i32) -> (i32, i32, i32) {
    %c0_i32 = arith.constant 0 : i32
    %c0_i32_0 = arith.constant 0 : i32
    %c0_i32_1 = arith.constant 0 : i32
    %c0_i32_2 = arith.constant 0 : i32
    return %c0_i32, %c0_i32_0, %c0_i32_1 : i32, i32, i32
  }
  func.func @transform_4(%arg0: i32) -> (i32, i32, i32) {
    %c0_i32 = arith.constant 0 : i32
    %c0_i32_0 = arith.constant 0 : i32
    %c0_i32_1 = arith.constant 0 : i32
    %c0_i32_2 = arith.constant 0 : i32
    return %c0_i32, %c0_i32_0, %c0_i32_1 : i32, i32, i32
  }
  func.func @transform_5(%arg0: i32) -> (i32, i32) {
    %c0_i32 = arith.constant 0 : i32
    %c0_i32_0 = arith.constant 0 : i32
    %c0_i32_1 = arith.constant 0 : i32
    return %c0_i32, %c0_i32_0 : i32, i32
  }
  func.func @transform_6(%arg0: i32) -> (i32, i32) {
    %c0_i32 = arith.constant 0 : i32
    %c0_i32_0 = arith.constant 0 : i32
    %c0_i32_1 = arith.constant 0 : i32
    return %c0_i32, %c0_i32_0 : i32, i32
  }
  func.func @transform_7(%arg0: i32) -> (i32, i32) {
    %c0_i32 = arith.constant 0 : i32
    %c0_i32_0 = arith.constant 0 : i32
    return %c0_i32, %arg0 : i32, i32
  }
}

</mosaic_0001>

<bundles_post_ra>
// kernel: tpu_custom_call.1
= control target key start
LH: loop header
LB: loop body
LE: loop exit
PB: predicated region body
PF: predicated region fallthrough
CT: control target
= control target key end

     0   :  { %s979_s0 = inlined_call_operand.vmem [shape: f32[256,2], index: 0, kind: input, shape index: {}]   ;;  %s980_s1 = inlined_call_operand.vmem [shape: f32[32,2], index: 1, kind: input, shape index: {}]   ;;  %s981_s2 = inlined_call_operand.vmem [shape: f32[32,1], index: 2, kind: input, shape index: {}]   ;;  %s982_s3 = inlined_call_operand.vmem [shape: f32[2,32,32], index: 3, kind: input, shape index: {}]   ;;  %s983_s4 = inlined_call_operand.vmem [shape: f32[2,32,1], index: 4, kind: input, shape index: {}]   ;;  %s984_s5 = inlined_call_operand.vmem [shape: f32[1,32], index: 5, kind: input, shape index: {}]   ;;  %s985_s6 = inlined_call_operand.<no memory space> [shape: f32[1,1], index: 6, kind: input, shape index: {}]   ;;  %s986_s7 = inlined_call_operand.hbm [shape: f32[1,256], index: 7, kind: output, shape index: {}]  }
   0x1   :  { %v12_v0 = vstv %s985_s6 }
   0x2   :  { %13 = vst [vmem:[#allocation2] sm:$0x1] %v12_v0 }
   0x3   :  { %v44_v1 = vld [vmem:[%s979_s0 + $0x78] sm:$0xff]  ;;  %vm89_vm0 = vcmask 15360   ;;  %v43_v3 = vld [vmem:[%s979_s0 + $0x70] sm:$0xff]  ;;  %v42_v5 = vld [vmem:[%s979_s0 + $0x68] sm:$0xff] }
   0x4   :  { %v60_v2 = vld [vmem:[%s979_s0 + $0xf8] sm:$0xff]  ;;  %557 = vmatpush.xpose.msk.msra.mxu0 %vm89_vm0, %v44_v1  ;;  %v59_v4 = vld [vmem:[%s979_s0 + $0xf0] sm:$0xff]  ;;  %v58_v6 = vld [vmem:[%s979_s0 + $0xe8] sm:$0xff] }
   0x5   :  { %577 = vmatpush.xpose.msk.msra.mxu1 %vm89_vm0, %v60_v2 }
   0x8   :  { %558 = vmatpush.xpose.msk.msra.mxu0 %vm89_vm0, %v43_v3 }
   0x9   :  { %578 = vmatpush.xpose.msk.msra.mxu1 %vm89_vm0, %v59_v4 }
   0xa   :  { %14 = vsyncpa [#allocation4], 0  ;;  %v41_v7 = vld [vmem:[%s979_s0 + $0x60] sm:$0xff]  ;;  %v40_v9 = vld [vmem:[%s979_s0 + $0x58] sm:$0xff]  ;;  %v702_v18 = vmov 0   ;;  %vm292_vm1 = vcmask 261120  }
   0xb   :  { %v57_v8 = vld [vmem:[%s979_s0 + $0xe0] sm:$0xff]  ;;  %v56_v10 = vld [vmem:[%s979_s0 + $0xd8] sm:$0xff]  ;;  %v39_v11 = vld [vmem:[%s979_s0 + $0x50] sm:$0xff]  ;;  %625 = vset.pattern.permute.xlu0 %v702_v18  ;;  %626 = vset.pattern.permute.xlu1 %v702_v18  ;;  %s703_s12 = smov [#allocation3]   ;;  %vm533_vm2 = vcmask 1040384  }
   0xc   :  { %559 = vmatpush.xpose.msk.msra.mxu0 %vm89_vm0, %v42_v5  ;;  %v55_v12 = vld [vmem:[%s979_s0 + $0xd0] sm:$0xff]  ;;  %v38_v13 = vld [vmem:[%s979_s0 + $0x48] sm:$0xff]  ;;  %v68_v15 = vld [vmem:[%s981_s2 + $0x18] sm:$0xff]  ;;  %627 = vset.pattern.permute.xlu2 %v702_v18  ;;  %s546_s13 = sshll.u32 %s703_s12, 4  ;;  %s547_s13 = int_to_ptr.vmem [resolvable:$true] %s546_s13 }
   0xd   :  { %579 = vmatpush.xpose.msk.msra.mxu1 %vm89_vm0, %v58_v6  ;;  %v54_v14 = vld [vmem:[%s979_s0 + $0xc8] sm:$0xff]  ;;  %v37_v16 = vld [vmem:[%s979_s0 + $0x40] sm:$0xff]  ;;  %86 = vperm.xlu0 %625, %v68_v15   ;;  %v36_v19 = vld [vmem:[%s979_s0 + $0x38] sm:$0xff] }
   0xe   :  { %v53_v17 = vld [vmem:[%s979_s0 + $0xc0] sm:$0xff]  ;;  %v52_v20 = vld [vmem:[%s979_s0 + $0xb8] sm:$0xff]  ;;  %v66_v21 = vld [vmem:[%s981_s2 + $0x8] sm:$0xff] }
   0xf   :  { %v67_v22 = vld [vmem:[%s981_s2 + $0x10] sm:$0xff]  ;;  %76 = vperm.xlu1 %626, %v66_v21   ;;  %v34_v25 = vld [vmem:[%s979_s0 + $0x28] sm:$0xff]  ;;  %v65_v27 = vld [vmem:[%s981_s2] sm:$0xff] }
  0x10   :  { %560 = vmatpush.xpose.msk.msra.mxu0 %vm89_vm0, %v41_v7  ;;  %v35_v23 = vld [vmem:[%s979_s0 + $0x30] sm:$0xff]  ;;  %v50_v26 = vld [vmem:[%s979_s0 + $0xa8] sm:$0xff]  ;;  %v33_v29 = vld [vmem:[%s979_s0 + $0x20] sm:$0xff] }
  0x11   :  { %580 = vmatpush.xpose.msk.msra.mxu1 %vm89_vm0, %v57_v8  ;;  %v51_v24 = vld [vmem:[%s979_s0 + $0xb0] sm:$0xff]  ;;  %v269_v28 = vld [vmem:[%s983_s4 + $0x8] sm:$0xff]  ;;  %v49_v30 = vld [vmem:[%s979_s0 + $0xa0] sm:$0xff] }
  0x12   :  { %v32_v31 = vld [vmem:[%s979_s0 + $0x18] sm:$0xff]  ;;  %v611_v33 = vld [vmem:[%s983_s4 + $0x30] sm:$0xff]  ;;  %v30_v36 = vld [vmem:[%s979_s0 + $0x8] sm:$0xff] }
  0x13   :  { %v48_v32 = vld [vmem:[%s979_s0 + $0x98] sm:$0xff]  ;;  %v31_v34 = vld [vmem:[%s979_s0 + $0x10] sm:$0xff]  ;;  %v46_v37 = vld [vmem:[%s979_s0 + $0x88] sm:$0xff] }
  0x14   :  { %561 = vmatpush.xpose.msk.msra.mxu0 %vm89_vm0, %v40_v9  ;;  %v47_v35 = vld [vmem:[%s979_s0 + $0x90] sm:$0xff]  ;;  %v268_v38 = vld [vmem:[%s983_s4] sm:$0xff]  ;;  %v610_v43 = vld [vmem:[%s983_s4 + $0x28] sm:$0xff] }
  0x15   :  { %581 = vmatpush.xpose.msk.msra.mxu1 %vm89_vm0, %v56_v10  ;;  %81 = vperm.xlu0 %625, %v67_v22   ;;  %v480_v39 = vld [vmem:[#allocation2] sm:$0x1]  ;;  %v62_v44 = vld [vmem:[%s980_s1 + $0x8] sm:$0xff]  ;;  %v63_v45 = vld [vmem:[%s980_s1 + $0x10] sm:$0xff] }
  0x16   :  { %v29_v40 = vld [vmem:[%s979_s0] sm:$0xff]  ;;  %v64_v46 = vld [vmem:[%s980_s1 + $0x18] sm:$0xff] }
  0x17   :  { %71 = vperm.xlu1 %626, %v65_v27   ;;  %v45_v41 = vld [vmem:[%s979_s0 + $0x80] sm:$0xff]  ;;  %v271_v5 = vld [vmem:[%s983_s4 + $0x18] sm:$0xff] }
  0x18   :  { %562 = vmatpush.xpose.msk.msra.mxu0 %vm89_vm0, %v39_v11  ;;  %v61_v42 = vld [vmem:[%s980_s1] sm:$0xff]  ;;  %289 = vperm.xlu2 %627, %v271_v5   ;;  %v612_v15 = vld [vmem:[%s983_s4 + $0x38] sm:$0xff] }
  0x19   :  { %582 = vmatpush.xpose.msk.msra.mxu1 %vm89_vm0, %v55_v12  ;;  %v264_v10 = vld [vmem:[%s982_s3] sm:$0xff]  ;;  %v267_v18 = vld [vmem:[%s982_s3 + $0x18] sm:$0xff] }
  0x1c   :  { %563 = vmatpush.xpose.msk.msra.mxu0 %vm89_vm0, %v38_v13  ;;  %v270_v13 = vld [vmem:[%s983_s4 + $0x10] sm:$0xff] }
  0x1d   :  { %583 = vmatpush.xpose.msk.msra.mxu1 %vm89_vm0, %v54_v14  ;;  %279 = vperm.xlu0 %625, %v269_v28   ;;  %v265_v14 = vld [vmem:[%s982_s3 + $0x8] sm:$0xff] }
  0x1f   :  { %274 = vperm.xlu1 %626, %v268_v38  }
  0x20   :  { %564 = vmatpush.xpose.msk.msra.mxu0 %vm89_vm0, %v37_v16  ;;  %284 = vperm.xlu2 %627, %v270_v13   ;;  %v266_v16 = vld [vmem:[%s982_s3 + $0x10] sm:$0xff]  ;;  %v479_v13 = vld [vmem:[%s984_s5] sm:$0x1]  ;;  %s548_s5 = sshll.u32 %s986_s7, 4  ;;  %s549_s5 = int_to_ptr.hbm [resolvable:$true] %s548_s5 }
  0x21   :  { %584 = vmatpush.xpose.msk.msra.mxu1 %vm89_vm0, %v53_v17  ;;  %v609_v17 = vld [vmem:[%s983_s4 + $0x20] sm:$0xff] }
  0x24   :  { %565 = vmatpush.xpose.msk.msra.mxu0 %vm89_vm0, %v36_v19 }
  0x25   :  { %585 = vmatpush.xpose.msk.msra.mxu1 %vm89_vm0, %v52_v20  ;;  %393 = vperm.xlu0 %625, %v611_v33  }
  0x27   :  { %388 = vperm.xlu1 %626, %v610_v43  }
  0x28   :  { %566 = vmatpush.xpose.msk.msra.mxu0 %vm89_vm0, %v35_v23  ;;  %398 = vperm.xlu2 %627, %v612_v15  }
  0x29   :  { %586 = vmatpush.xpose.msk.msra.mxu1 %vm89_vm0, %v51_v24 }
  0x2c   :  { %567 = vmatpush.xpose.msk.msra.mxu0 %vm89_vm0, %v34_v25 }
  0x2d   :  { %587 = vmatpush.xpose.msk.msra.mxu1 %vm89_vm0, %v50_v26  ;;  %483 = vperm.xlu0 %625, %v480_v39  }
  0x30   :  { %568 = vmatpush.xpose.msk.msra.mxu0 %vm89_vm0, %v33_v29  ;;  %383 = vperm.xlu2 %627, %v609_v17  }
  0x31   :  { %588 = vmatpush.xpose.msk.msra.mxu1 %vm89_vm0, %v49_v30 }
  0x34   :  { %569 = vmatpush.xpose.msk.msra.mxu0 %vm89_vm0, %v32_v31 }
  0x35   :  { %589 = vmatpush.xpose.msk.msra.mxu1 %vm89_vm0, %v48_v32 }
  0x38   :  { %570 = vmatpush.xpose.msk.msra.mxu0 %vm89_vm0, %v31_v34 }
  0x39   :  { %590 = vmatpush.xpose.msk.msra.mxu1 %vm89_vm0, %v47_v35 }
  0x3c   :  { %571 = vmatpush.xpose.msk.msra.mxu0 %vm89_vm0, %v30_v36 }
  0x3d   :  { %591 = vmatpush.xpose.msk.msra.mxu1 %vm89_vm0, %v46_v37 }
  0x40   :  { %572 = vmatpush.xpose.msk.msra.mxu0 %vm89_vm0, %v29_v40 }
  0x41   :  { %592 = vmatpush.xpose.msk.msra.mxu1 %vm89_vm0, %v45_v41 }
  0x43   :  { %573 = vmatmul.msk.f32.vlgmr.msra.gmra.mxu0 %vm89_vm0, %v61_v42 }
  0x44   :  { %593 = vmatmul.msk.f32.vlgmr.msra.gmra.mxu1 %vm89_vm0, %v61_v42 }
  0x4b   :  { %574 = vmatmul.msk.f32.gmra.mxu0 %vm89_vm0, %v62_v44 }
  0x4c   :  { %594 = vmatmul.msk.f32.gmra.mxu1 %vm89_vm0, %v62_v44 }
  0x53   :  { %575 = vmatmul.msk.f32.gmra.mxu0 %vm89_vm0, %v63_v45 }
  0x54   :  { %595 = vmatmul.msk.f32.gmra.mxu1 %vm89_vm0, %v63_v45  ;;  %v605_v45 = vld [vmem:[%s982_s3 + $0x20] sm:$0xff] }
  0x5b   :  { %576 = vmatmul.msk.f32.gmra.mxu0 %vm89_vm0, %v64_v46 }
  0x5c   :  { %596 = vmatmul.msk.f32.gmra.mxu1 %vm89_vm0, %v64_v46 }
  0x72   :  { %v290_v23 = vpop.permute.xlu2 %289 }
  0x7a   :  { %v285_v26 = vpop.permute.xlu2 %284 }
  0x7f   :  { %v87_v51 = vpop.permute.xlu0 %86 }
  0x81   :  { %v77_v54 = vpop.permute.xlu1 %76 }
  0x87   :  { %v82_v55 = vpop.permute.xlu0 %81 }
  0x89   :  { %v72_v62 = vpop.permute.xlu1 %71 }
  0x8f   :  { %v280_v31 = vpop.permute.xlu0 %279 }
  0x91   :  { %v275_v35 = vpop.permute.xlu1 %274 }
  0xc0   :  { %v215_v47 = vpop.f32.mrf.mxu0 }
  0xc1   :  { %v244_v48 = vpop.f32.mrf.mxu1  ;;  %v216_v1 = vadd.f32 %v215_v47, %v72_v62 }
  0xc2   :  { %v245_v2 = vadd.f32 %v244_v48, %v72_v62  ;;  %v606_v48 = vld [vmem:[%s982_s3 + $0x28] sm:$0xff] }
  0xc8   :  { %v218_v49 = vpop.f32.mrf.mxu0 }
  0xc9   :  { %v247_v50 = vpop.f32.mrf.mxu1  ;;  %v219_v63 = vadd.f32 %v218_v49, %v77_v54  ;;  %v607_v49 = vld [vmem:[%s982_s3 + $0x30] sm:$0xff] }
  0xca   :  { %v248_v0 = vadd.f32 %v247_v50, %v77_v54  ;;  %v608_v50 = vld [vmem:[%s982_s3 + $0x38] sm:$0xff] }
  0xd0   :  { %v221_v52 = vpop.f32.mrf.mxu0 }
  0xd1   :  { %v250_v53 = vpop.f32.mrf.mxu1  ;;  %v222_v58 = vadd.f32 %v221_v52, %v82_v55 }
  0xd2   :  { %v251_v61 = vadd.f32 %v250_v53, %v82_v55 }
  0xd8   :  { %v224_v56 = vpop.f32.mrf.mxu0 }
  0xd9   :  { %v253_v57 = vpop.f32.mrf.mxu1  ;;  %v225_v59 = vadd.f32 %v224_v56, %v87_v51 }
  0xda   :  { %v254_v60 = vadd.f32 %v253_v57, %v87_v51  ;;  %v399_v57 = vpop.permute.xlu2 %398 }
  0xdb   :  { %628 = vtanh.f32 %v225_v59 }
  0xdc   :  { %630 = vtanh.f32 %v254_v60 }
  0xdd   :  { %632 = vtanh.f32 %v222_v58  ;;  %v394_v58 = vpop.permute.xlu0 %393 }
  0xde   :  { %634 = vtanh.f32 %v251_v61 }
  0xdf   :  { %636 = vtanh.f32 %v219_v63  ;;  %v389_v63 = vpop.permute.xlu1 %388 }
  0xe0   :  { %638 = vtanh.f32 %v248_v0 }
  0xe1   :  { %v629_v3 = vpop.eup %628  ;;  %640 = vtanh.f32 %v216_v1 }
  0xe2   :  { %v631_v4 = vpop.eup %630  ;;  %642 = vtanh.f32 %v245_v2  ;;  %317 = vmatpush.msra.mxu2 %v629_v3  ;;  %v384_v3 = vpop.permute.xlu2 %383 }
  0xe3   :  { %v633_v6 = vpop.eup %632  ;;  %346 = vmatpush.msra.mxu3 %v631_v4 }
  0xe4   :  { %v635_v7 = vpop.eup %634  ;;  %318 = vmatpush.msra.mxu2 %v633_v6 }
  0xe5   :  { %v637_v8 = vpop.eup %636  ;;  %347 = vmatpush.msra.mxu3 %v635_v7 }
  0xe6   :  { %v639_v9 = vpop.eup %638  ;;  %319 = vmatpush.msra.mxu2 %v637_v8 }
  0xe7   :  { %v641_v11 = vpop.eup %640  ;;  %348 = vmatpush.msra.mxu3 %v639_v9 }
  0xe8   :  { %v643_v12 = vpop.eup %642  ;;  %320 = vmatpush.msra.mxu2 %v641_v11 }
  0xe9   :  { %349 = vmatpush.msra.mxu3 %v643_v12  ;;  %597 = vmatmul.msk.f32.vlgmr.msra.gmra.mxu2 %vm292_vm1, %v264_v10 }
  0xea   :  { %601 = vmatmul.msk.f32.vlgmr.msra.gmra.mxu3 %vm292_vm1, %v264_v10 }
  0xf1   :  { %598 = vmatmul.msk.f32.gmra.mxu2 %vm292_vm1, %v265_v14 }
  0xf2   :  { %602 = vmatmul.msk.f32.gmra.mxu3 %vm292_vm1, %v265_v14 }
  0xf9   :  { %599 = vmatmul.msk.f32.gmra.mxu2 %vm292_vm1, %v266_v16 }
  0xfa   :  { %603 = vmatmul.msk.f32.gmra.mxu3 %vm292_vm1, %v266_v16  ;;  %v484_v16 = vpop.permute.xlu0 %483 }
  0xfb   :  { %v486_v17 = vperm.slane %v484_v16, 0 }
 0x101   :  { %600 = vmatmul.msk.f32.gmra.mxu2 %vm292_vm1, %v267_v18 }
 0x102   :  { %604 = vmatmul.msk.f32.gmra.mxu3 %vm292_vm1, %v267_v18  ;;  %v536_v18 = vlaneseq }
 0x104   :  { %vm538_vm3 = vcmp.lt.s32.totalorder %v536_v18, 256 }
 0x16c   :  { %v322_v19 = vpop.f32.mrf.mxu2 }
 0x16d   :  { %v351_v20 = vpop.f32.mrf.mxu3  ;;  %v323_v37 = vadd.f32 %v322_v19, %v275_v35 }
 0x16e   :  { %v352_v38 = vadd.f32 %v351_v20, %v275_v35 }
 0x174   :  { %v325_v21 = vpop.f32.mrf.mxu2 }
 0x175   :  { %v354_v22 = vpop.f32.mrf.mxu3  ;;  %v326_v34 = vadd.f32 %v325_v21, %v280_v31 }
 0x176   :  { %v355_v36 = vadd.f32 %v354_v22, %v280_v31 }
 0x17c   :  { %v328_v24 = vpop.f32.mrf.mxu2 }
 0x17d   :  { %v357_v25 = vpop.f32.mrf.mxu3  ;;  %v329_v28 = vadd.f32 %v328_v24, %v285_v26 }
 0x17e   :  { %v358_v32 = vadd.f32 %v357_v25, %v285_v26 }
 0x184   :  { %v331_v27 = vpop.f32.mrf.mxu2 }
 0x185   :  { %v332_v29 = vadd.f32 %v331_v27, %v290_v23  ;;  %v360_v30 = vpop.f32.mrf.mxu3 }
 0x186   :  { %v361_v33 = vadd.f32 %v360_v30, %v290_v23 }
 0x187   :  { %644 = vtanh.f32 %v332_v29 }
 0x188   :  { %646 = vtanh.f32 %v361_v33 }
 0x189   :  { %648 = vtanh.f32 %v329_v28 }
 0x18a   :  { %650 = vtanh.f32 %v358_v32 }
 0x18b   :  { %652 = vtanh.f32 %v326_v34 }
 0x18c   :  { %654 = vtanh.f32 %v355_v36 }
 0x18d   :  { %v645_v39 = vpop.eup %644  ;;  %656 = vtanh.f32 %v323_v37 }
 0x18e   :  { %v647_v40 = vpop.eup %646  ;;  %658 = vtanh.f32 %v352_v38  ;;  %425 = vmatpush.msrb.mxu2 %v645_v39 }
 0x18f   :  { %v649_v41 = vpop.eup %648  ;;  %454 = vmatpush.msrb.mxu3 %v647_v40 }
 0x190   :  { %v651_v42 = vpop.eup %650  ;;  %426 = vmatpush.msrb.mxu2 %v649_v41 }
 0x191   :  { %v653_v43 = vpop.eup %652  ;;  %455 = vmatpush.msrb.mxu3 %v651_v42 }
 0x192   :  { %v655_v44 = vpop.eup %654  ;;  %427 = vmatpush.msrb.mxu2 %v653_v43 }
 0x193   :  { %v657_v46 = vpop.eup %656  ;;  %456 = vmatpush.msrb.mxu3 %v655_v44 }
 0x194   :  { %v659_v47 = vpop.eup %658  ;;  %428 = vmatpush.msrb.mxu2 %v657_v46 }
 0x195   :  { %457 = vmatpush.msrb.mxu3 %v659_v47  ;;  %613 = vmatmul.msk.f32.vlgmr.msrb.gmra.mxu2 %vm292_vm1, %v605_v45 }
 0x196   :  { %617 = vmatmul.msk.f32.vlgmr.msrb.gmra.mxu3 %vm292_vm1, %v605_v45 }
 0x19d   :  { %614 = vmatmul.msk.f32.gmra.mxu2 %vm292_vm1, %v606_v48 }
 0x19e   :  { %618 = vmatmul.msk.f32.gmra.mxu3 %vm292_vm1, %v606_v48 }
 0x1a5   :  { %615 = vmatmul.msk.f32.gmra.mxu2 %vm292_vm1, %v607_v49 }
 0x1a6   :  { %619 = vmatmul.msk.f32.gmra.mxu3 %vm292_vm1, %v607_v49 }
 0x1ad   :  { %616 = vmatmul.msk.f32.gmra.mxu2 %vm292_vm1, %v608_v50 }
 0x1ae   :  { %620 = vmatmul.msk.f32.gmra.mxu3 %vm292_vm1, %v608_v50 }
 0x218   :  { %v430_v51 = vpop.f32.mrf.mxu2 }
 0x219   :  { %v459_v52 = vpop.f32.mrf.mxu3  ;;  %v431_v5 = vadd.f32 %v430_v51, %v384_v3 }
 0x21a   :  { %v460_v6 = vadd.f32 %v459_v52, %v384_v3 }
 0x220   :  { %v433_v53 = vpop.f32.mrf.mxu2 }
 0x221   :  { %v462_v54 = vpop.f32.mrf.mxu3  ;;  %v434_v2 = vadd.f32 %v433_v53, %v389_v63 }
 0x222   :  { %v463_v4 = vadd.f32 %v462_v54, %v389_v63 }
 0x228   :  { %v436_v55 = vpop.f32.mrf.mxu2 }
 0x229   :  { %v465_v56 = vpop.f32.mrf.mxu3  ;;  %v437_v60 = vadd.f32 %v436_v55, %v394_v58 }
 0x22a   :  { %v466_v0 = vadd.f32 %v465_v56, %v394_v58 }
 0x230   :  { %v439_v59 = vpop.f32.mrf.mxu2 }
 0x231   :  { %v440_v61 = vadd.f32 %v439_v59, %v399_v57  ;;  %v468_v62 = vpop.f32.mrf.mxu3 }
 0x232   :  { %v469_v1 = vadd.f32 %v468_v62, %v399_v57 }
 0x233   :  { %660 = vtanh.f32 %v440_v61 }
 0x234   :  { %662 = vtanh.f32 %v469_v1 }
 0x235   :  { %664 = vtanh.f32 %v437_v60 }
 0x236   :  { %666 = vtanh.f32 %v466_v0 }
 0x237   :  { %668 = vtanh.f32 %v434_v2 }
 0x238   :  { %670 = vtanh.f32 %v463_v4 }
 0x239   :  { %v661_v7 = vpop.eup %660  ;;  %672 = vtanh.f32 %v431_v5 }
 0x23a   :  { %v663_v8 = vpop.eup %662  ;;  %674 = vtanh.f32 %v460_v6  ;;  %502 = vmatpush.msra.mxu2 %v661_v7 }
 0x23b   :  { %v665_v9 = vpop.eup %664  ;;  %522 = vmatpush.msra.mxu3 %v663_v8 }
 0x23c   :  { %v667_v10 = vpop.eup %666  ;;  %503 = vmatpush.msra.mxu2 %v665_v9 }
 0x23d   :  { %v669_v11 = vpop.eup %668  ;;  %523 = vmatpush.msra.mxu3 %v667_v10 }
 0x23e   :  { %v671_v12 = vpop.eup %670  ;;  %504 = vmatpush.msra.mxu2 %v669_v11 }
 0x23f   :  { %v673_v14 = vpop.eup %672  ;;  %524 = vmatpush.msra.mxu3 %v671_v12 }
 0x240   :  { %v675_v15 = vpop.eup %674  ;;  %505 = vmatpush.msra.mxu2 %v673_v14 }
 0x241   :  { %525 = vmatpush.msra.mxu3 %v675_v15  ;;  %621 = vmatmul.msk.f32.vlgmr.msra.gmra.mxu2 %vm292_vm1, %v479_v13 }
 0x242   :  { %622 = vmatmul.msk.f32.vlgmr.msra.gmra.mxu3 %vm292_vm1, %v479_v13 }
 0x2c4   :  { %v507_v19 = vpop.f32.mrf.mxu2 }
 0x2c5   :  { %v527_v20 = vpop.f32.mrf.mxu3  ;;  %v508_v22 = vadd.f32 %v507_v19, %v486_v17 }
 0x2c6   :  { %v528_v21 = vadd.f32 %v527_v20, %v486_v17 }
 0x2c8   :  { %v532_v23 = vrot.slane %v528_v21, 7 }
 0x2ca   :  { %v534_v24 = vsel %vm533_vm2, %v508_v22, %v532_v23 }
 0x2cb   :  { %540 = vst.msk [vmem:[#allocation3] sm:$0x3] %vm538_vm3, %v534_v24 }
 0x2cc   :  { %551 = dma.vmem_to_hbm [thread:$0]  %s547_s13, 32, %s549_s5, [#allocation4]  }
 0x2cd   :  { %700 = dma.done.wait [#allocation4], 32  }
 0x2ce   :  { %701 = vsyncadd [#allocation4], 4294967264 }
 0x2cf   :  { %556 = vsyncpa [#allocation4], 1 }

</bundles_post_ra>
